<compile_context>
chip_gen: v5e
topology: v5e:2x2
jax: 0.10.0
libtpu: 0.0.40
codegen_flags: <defaults>
</compile_context>

<pallas_src>
import functools

import numpy as np
import jax
import jax.numpy as jnp
from jax.experimental import pallas as pl
from jax.experimental.pallas import tpu as pltpu

BN_EPS = 1e-5
# Dtype fed to the MXU.  Kept f32 here (C=16 is too small for the MXU to be the
# bottleneck and it keeps the numerical check tight); flip to jnp.bfloat16 on
# v5e/v6e for larger channel counts (accumulation stays f32).
DOT_DTYPE = jnp.float32


def _re_block_kernel(
    x_ref,                                   # (B, C, L)  NCL, L on lanes
    w1_ref, b1_ref, g1_ref, be1_ref,         # cbr1: im2col W (C, K*C), bias/gamma/beta (C, 1)
    w2_ref, b2_ref, g2_ref, be2_ref,         # cbr2
    sw1_ref, sb1_ref, sw2_ref, sb2_ref,      # SE 1x1 convs: (Cmid,C),(Cmid,1),(C,Cmid),(C,1)
    out_ref,                                 # (B, C, L)
    pad_ref,                                 # (B, C, L + 2*pad) scratch (zero borders)
    *, B, L, C, K, dil, pad,
):
    Lbuf = L + 2 * pad
    Lout = Lbuf - dil * (K - 1)              # conv output length (stride 1)
    inv_n = 1.0 / float(B * Lout)

    def conbr(w_ref, b_ref, g_ref, be_ref):
        """Conv1d + BatchNorm1d(train) + ReLU on the padded buffer.

        Returns a list of per-batch (C, L) f32 tiles (already sliced to L)."""
        w = w_ref[...].astype(DOT_DTYPE)                       # (C, K*C)  hoisted
        bias = b_ref[...]                                      # (C, 1)    hoisted
        accs = []
        s = jnp.zeros((C, 1), jnp.float32)
        ss = jnp.zeros((C, 1), jnp.float32)
        for b in range(B):
            xp = pad_ref[b]                                    # (C, Lbuf)
            # im2col: stack the K dilated taps along channels (sublanes)
            xcol = jnp.concatenate(
                [xp[:, k * dil:k * dil + Lout] for k in range(K)], axis=0)   # (K*C, Lout)
            acc = jnp.dot(w, xcol.astype(DOT_DTYPE),
                          preferred_element_type=jnp.float32) + bias         # (C, Lout)
            accs.append(acc)
            # single-pass BN statistics (sum and sum of squares, lane reduce)
            s = s + jnp.sum(acc, axis=1, keepdims=True)
            ss = ss + jnp.sum(acc * acc, axis=1, keepdims=True)

        mean = s * inv_n                                       # (C, 1)
        var = ss * inv_n - mean * mean                         # biased (training mode)
        scale = g_ref[...] * jax.lax.rsqrt(var + BN_EPS)       # (C, 1)
        shift = be_ref[...] - mean * scale                     # (C, 1)

        outs = []
        for acc in accs:
            y = jnp.maximum(acc * scale + shift, 0.0)          # BN + ReLU
            if Lout != L:                                      # [:, :, :L] slice
                y = y[:, :L]
            outs.append(y)
        return outs

    # ---- zero only the two padding border strips, once ----
    if pad > 0:
        zeros = jnp.zeros((B, C, pad), jnp.float32)
        pad_ref[:, :, :pad] = zeros
        pad_ref[:, :, pad + L:] = zeros

    # ---- stage 1: cbr1(x) ----
    pad_ref[:, :, pad:pad + L] = x_ref[...]
    h1 = conbr(w1_ref, b1_ref, g1_ref, be1_ref)

    # ---- stage 2: cbr2(h1) -- write h1 straight back into the padded buffer ----
    for b in range(B):
        pad_ref[b, :, pad:pad + L] = h1[b]
    h2 = conbr(w2_ref, b2_ref, g2_ref, be2_ref)

    # ---- SE block: tiny (C x B) problem, channels on sublanes ----
    pooled = jnp.concatenate(
        [jnp.sum(h2[b], axis=1, keepdims=True) for b in range(B)],
        axis=1) * (1.0 / float(L))                             # (C, B)
    z1 = jnp.maximum(
        jnp.dot(sw1_ref[...], pooled, preferred_element_type=jnp.float32)
        + sb1_ref[...], 0.0)                                   # (Cmid, B)
    z2 = jnp.dot(sw2_ref[...], z1, preferred_element_type=jnp.float32) + sb2_ref[...]
    se = pl.reciprocal(1.0 + jnp.exp(-z2))                     # sigmoid, (C, B)

    # ---- residual add: one lane-dense (C, L) store per batch ----
    for b in range(B):
        out_ref[b] = x_ref[b] + h2[b] + se[:, b:b + 1]


def re_block_forward(x_ncl, p, *, kernel_size, dilation):
    """x_ncl: (B, C, L) float32, PyTorch NCL layout (kept end-to-end). Returns (B, C, L)."""
    B, C, L = x_ncl.shape
    K, dil = kernel_size, dilation
    pad = int(np.ceil(dil * (K - 1) / 2))
    Lbuf = L + 2 * pad

    kern = functools.partial(_re_block_kernel, B=B, L=L, C=C, K=K, dil=dil, pad=pad)
    vmem = pl.BlockSpec(memory_space=pltpu.MemorySpace.VMEM)

    return pl.pallas_call(
        kern,
        out_shape=jax.ShapeDtypeStruct((B, C, L), jnp.float32),
        in_specs=[vmem] * 13,
        out_specs=vmem,
        scratch_shapes=[pltpu.VMEM((B, C, Lbuf), jnp.float32)],
        # Explicit VMEM budget (everything here is < 1 MiB). For realistic L,
        # re-derive from the L-tile sizes; v7x has only 64 MiB physical VMEM.
        compiler_params=pltpu.CompilerParams(vmem_limit_bytes=32 * 1024 * 1024),
    )(x_ncl.astype(jnp.float32),
      p["w1"], p["b1"], p["g1"], p["be1"],
      p["w2"], p["b2"], p["g2"], p["be2"],
      p["sw1"], p["sb1"], p["sw2"], p["sb2"])


def init_params(key, C, K):
    """Deterministic synthetic parameters (shapes implied by re_block.__init__)."""
    Cmid = C // 8
    assert Cmid >= 1, "out_layer must be >= 8 for the SE block"
    ks = jax.random.split(key, 12)

    def nrm(k, shape, scale=0.1):
        return (scale * jax.random.normal(k, shape)).astype(jnp.float32)

    return dict(
        # Conv weights stored im2col-style as (Cout, K*Cin); block k holds the
        # PyTorch weight slice W[:, :, k] (Cout, Cin).
        w1=nrm(ks[0], (C, K * C)), b1=nrm(ks[1], (C, 1)),
        g1=1.0 + nrm(ks[2], (C, 1)), be1=nrm(ks[3], (C, 1)),
        w2=nrm(ks[4], (C, K * C)), b2=nrm(ks[5], (C, 1)),
        g2=1.0 + nrm(ks[6], (C, 1)), be2=nrm(ks[7], (C, 1)),
        # SE 1x1 convs in PyTorch (Cout, Cin) layout (kernel dim squeezed).
        sw1=nrm(ks[8], (Cmid, C)), sb1=nrm(ks[9], (Cmid, 1)),
        sw2=nrm(ks[10], (C, Cmid)), sb2=nrm(ks[11], (C, 1)),
    )


def re_block_reference(x_ncl, p, *, kernel_size, dilation):
    """Pure-JAX reference (same math, no Pallas), NCL layout throughout."""
    B, C, L = x_ncl.shape
    K, dil = kernel_size, dilation
    pad = int(np.ceil(dil * (K - 1) / 2))
    x = x_ncl.astype(jnp.float32)

    def conbr(h, wcol, b, g, be):
        hp = jnp.pad(h, ((0, 0), (0, 0), (pad, pad)))
        Lout = hp.shape[2] - dil * (K - 1)
        xcol = jnp.concatenate(
            [hp[:, :, k * dil:k * dil + Lout] for k in range(K)], axis=1)   # (B, K*C, Lout)
        acc = jnp.einsum("dk,bkl->bdl", wcol, xcol) + b
        mean = jnp.mean(acc, axis=(0, 2), keepdims=True)
        var = jnp.mean((acc - mean) ** 2, axis=(0, 2), keepdims=True)
        y = (acc - mean) / jnp.sqrt(var + BN_EPS) * g + be
        return jnp.maximum(y, 0.0)[:, :, :L]

    h1 = conbr(x, p["w1"], p["b1"], p["g1"], p["be1"])
    h2 = conbr(h1, p["w2"], p["b2"], p["g2"], p["be2"])
    se = jnp.mean(h2, axis=2)                                     # (B, C)
    se = jnp.maximum(se @ p["sw1"].T + p["sb1"][:, 0], 0.0)       # (B, Cmid)
    se = jax.nn.sigmoid(se @ p["sw2"].T + p["sb2"][:, 0])         # (B, C)
    return x + h2 + se[:, :, None]


if __name__ == "__main__":
    # in_layer == out_layer == 16 (residual add + SE needs C >= 8);
    # L = 128 keeps the lane dimension dense (multiple of 128).
    B, C, L = 2, 16, 128
    key = jax.random.PRNGKey(0)
    kx, kp = jax.random.split(key)
    x = jax.random.normal(kx, (B, C, L), dtype=jnp.float32)      # PyTorch NCL input

    out = None
    for (K, DIL) in ((3, 1), (3, 2)):                            # pad = 1 and pad = 2
        params = init_params(kp, C, K)
        out = jax.block_until_ready(
            re_block_forward(x, params, kernel_size=K, dilation=DIL))
        assert out.shape == (B, C, L)
        ref = re_block_reference(x, params, kernel_size=K, dilation=DIL)
        np.testing.assert_allclose(np.asarray(out), np.asarray(ref),
                                   rtol=1e-4, atol=1e-4)

    print("KERNEL_OK")
</pallas_src>

<mosaic_0001>
module attributes {stable_mosaic.version = 11 : i64} {
  func.func @_re_block_kernel(%arg0: memref<2x16x128xf32, #tpu.memory_space<vmem>>, %arg1: memref<16x48xf32, #tpu.memory_space<vmem>>, %arg2: memref<16x1xf32, #tpu.memory_space<vmem>>, %arg3: memref<16x1xf32, #tpu.memory_space<vmem>>, %arg4: memref<16x1xf32, #tpu.memory_space<vmem>>, %arg5: memref<16x48xf32, #tpu.memory_space<vmem>>, %arg6: memref<16x1xf32, #tpu.memory_space<vmem>>, %arg7: memref<16x1xf32, #tpu.memory_space<vmem>>, %arg8: memref<16x1xf32, #tpu.memory_space<vmem>>, %arg9: memref<2x16xf32, #tpu.memory_space<vmem>>, %arg10: memref<2x1xf32, #tpu.memory_space<vmem>>, %arg11: memref<16x2xf32, #tpu.memory_space<vmem>>, %arg12: memref<16x1xf32, #tpu.memory_space<vmem>>, %arg13: memref<2x16x128xf32, #tpu.memory_space<vmem>>, %arg14: memref<2x16x130xf32, #tpu.memory_space<vmem>>) attributes {dimension_semantics = [], scalar_prefetch = 0 : i64, scratch_operands = 1 : i64, tpu.core_type = #tpu.core_type<tc>} {
    %cst = arith.constant 0.000000e+00 : f32
    %0 = vector.broadcast %cst : f32 to vector<2x16x1xf32>
    %c0 = arith.constant 0 : index
    %c0_0 = arith.constant 0 : index
    %c0_1 = arith.constant 0 : index
    %1 = vector.load %arg14[%c0, %c0_0, %c0_1] : memref<2x16x130xf32, #tpu.memory_space<vmem>>, vector<2x16x1xf32>
    tpu.vector_store %arg14[%c0, %c0_0, %c0_1], %0 {strides = array<i32>} : memref<2x16x130xf32, #tpu.memory_space<vmem>>, vector<2x16x1xf32>,
    %c0_2 = arith.constant 0 : index
    %c0_3 = arith.constant 0 : index
    %c129 = arith.constant 129 : index
    %2 = vector.load %arg14[%c0_2, %c0_3, %c129] : memref<2x16x130xf32, #tpu.memory_space<vmem>>, vector<2x16x1xf32>
    tpu.vector_store %arg14[%c0_2, %c0_3, %c129], %0 {strides = array<i32>} : memref<2x16x130xf32, #tpu.memory_space<vmem>>, vector<2x16x1xf32>,
    %c0_4 = arith.constant 0 : index
    %c0_5 = arith.constant 0 : index
    %c0_6 = arith.constant 0 : index
    %3 = vector.load %arg0[%c0_4, %c0_5, %c0_6] : memref<2x16x128xf32, #tpu.memory_space<vmem>>, vector<2x16x128xf32>
    %c0_7 = arith.constant 0 : index
    %c0_8 = arith.constant 0 : index
    %c1 = arith.constant 1 : index
    %4 = vector.load %arg14[%c0_7, %c0_8, %c1] : memref<2x16x130xf32, #tpu.memory_space<vmem>>, vector<2x16x128xf32>
    tpu.vector_store %arg14[%c0_7, %c0_8, %c1], %3 {strides = array<i32>} : memref<2x16x130xf32, #tpu.memory_space<vmem>>, vector<2x16x128xf32>,
    %c0_9 = arith.constant 0 : index
    %c0_10 = arith.constant 0 : index
    %5 = vector.load %arg1[%c0_9, %c0_10] : memref<16x48xf32, #tpu.memory_space<vmem>>, vector<16x48xf32>
    %c0_11 = arith.constant 0 : index
    %c0_12 = arith.constant 0 : index
    %6 = vector.load %arg2[%c0_11, %c0_12] : memref<16x1xf32, #tpu.memory_space<vmem>>, vector<16x1xf32>
    %cst_13 = arith.constant 0.000000e+00 : f32
    %7 = vector.broadcast %cst_13 : f32 to vector<16x1xf32>
    %cst_14 = arith.constant 0.000000e+00 : f32
    %8 = vector.broadcast %cst_14 : f32 to vector<16x1xf32>
    %c0_15 = arith.constant 0 : index
    %c0_16 = arith.constant 0 : index
    %c0_17 = arith.constant 0 : index
    %9 = vector.load %arg14[%c0_15, %c0_16, %c0_17] : memref<2x16x130xf32, #tpu.memory_space<vmem>>, vector<1x16x130xf32>
    %10 = vector.shape_cast %9 : vector<1x16x130xf32> to vector<16x130xf32>
    %11 = vector.extract_strided_slice %10 {offsets = [0, 0], sizes = [16, 128], strides = [1, 1]} : vector<16x130xf32> to vector<16x128xf32>
    %12 = vector.extract_strided_slice %10 {offsets = [0, 1], sizes = [16, 128], strides = [1, 1]} : vector<16x130xf32> to vector<16x128xf32>
    %13 = vector.extract_strided_slice %10 {offsets = [0, 2], sizes = [16, 128], strides = [1, 1]} : vector<16x130xf32> to vector<16x128xf32>
    %14 = tpu.concatenate %11, %12, %13 in 0 : vector<16x128xf32>, vector<16x128xf32>, vector<16x128xf32> -> vector<48x128xf32>
    %cst_18 = arith.constant dense<0.000000e+00> : vector<16x128xf32>
    %15 = tpu.matmul %5, %14, %cst_18 {dimension_numbers = #tpu.dot_dimension_numbers<[1], [0], [0], [1], [0, 0, 1, 1], [], []>} : vector<16x48xf32>, vector<48x128xf32>, vector<16x128xf32> -> vector<16x128xf32>
    %16 = vector.broadcast %6 : vector<16x1xf32> to vector<16x128xf32>
    %17 = arith.addf %15, %16 : vector<16x128xf32>
    %cst_19 = arith.constant dense<0.000000e+00> : vector<16xf32>
    %18 = vector.multi_reduction <add>, %17, %cst_19 [1] : vector<16x128xf32> to vector<16xf32>
    %19 = vector.shape_cast %18 : vector<16xf32> to vector<16x1xf32>
    %20 = arith.addf %7, %19 : vector<16x1xf32>
    %21 = arith.mulf %17, %17 : vector<16x128xf32>
    %cst_20 = arith.constant dense<0.000000e+00> : vector<16xf32>
    %22 = vector.multi_reduction <add>, %21, %cst_20 [1] : vector<16x128xf32> to vector<16xf32>
    %23 = vector.shape_cast %22 : vector<16xf32> to vector<16x1xf32>
    %24 = arith.addf %8, %23 : vector<16x1xf32>
    %c1_21 = arith.constant 1 : index
    %c0_22 = arith.constant 0 : index
    %c0_23 = arith.constant 0 : index
    %25 = vector.load %arg14[%c1_21, %c0_22, %c0_23] : memref<2x16x130xf32, #tpu.memory_space<vmem>>, vector<1x16x130xf32>
    %26 = vector.shape_cast %25 : vector<1x16x130xf32> to vector<16x130xf32>
    %27 = vector.extract_strided_slice %26 {offsets = [0, 0], sizes = [16, 128], strides = [1, 1]} : vector<16x130xf32> to vector<16x128xf32>
    %28 = vector.extract_strided_slice %26 {offsets = [0, 1], sizes = [16, 128], strides = [1, 1]} : vector<16x130xf32> to vector<16x128xf32>
    %29 = vector.extract_strided_slice %26 {offsets = [0, 2], sizes = [16, 128], strides = [1, 1]} : vector<16x130xf32> to vector<16x128xf32>
    %30 = tpu.concatenate %27, %28, %29 in 0 : vector<16x128xf32>, vector<16x128xf32>, vector<16x128xf32> -> vector<48x128xf32>
    %cst_24 = arith.constant dense<0.000000e+00> : vector<16x128xf32>
    %31 = tpu.matmul %5, %30, %cst_24 {dimension_numbers = #tpu.dot_dimension_numbers<[1], [0], [0], [1], [0, 0, 1, 1], [], []>} : vector<16x48xf32>, vector<48x128xf32>, vector<16x128xf32> -> vector<16x128xf32>
    %32 = vector.broadcast %6 : vector<16x1xf32> to vector<16x128xf32>
    %33 = arith.addf %31, %32 : vector<16x128xf32>
    %cst_25 = arith.constant dense<0.000000e+00> : vector<16xf32>
    %34 = vector.multi_reduction <add>, %33, %cst_25 [1] : vector<16x128xf32> to vector<16xf32>
    %35 = vector.shape_cast %34 : vector<16xf32> to vector<16x1xf32>
    %36 = arith.addf %20, %35 : vector<16x1xf32>
    %37 = arith.mulf %33, %33 : vector<16x128xf32>
    %cst_26 = arith.constant dense<0.000000e+00> : vector<16xf32>
    %38 = vector.multi_reduction <add>, %37, %cst_26 [1] : vector<16x128xf32> to vector<16xf32>
    %39 = vector.shape_cast %38 : vector<16xf32> to vector<16x1xf32>
    %40 = arith.addf %24, %39 : vector<16x1xf32>
    %cst_27 = arith.constant 3.906250e-03 : f32
    %41 = vector.broadcast %cst_27 : f32 to vector<16x1xf32>
    %42 = arith.mulf %36, %41 : vector<16x1xf32>
    %cst_28 = arith.constant 3.906250e-03 : f32
    %43 = vector.broadcast %cst_28 : f32 to vector<16x1xf32>
    %44 = arith.mulf %40, %43 : vector<16x1xf32>
    %45 = arith.mulf %42, %42 : vector<16x1xf32>
    %46 = arith.subf %44, %45 : vector<16x1xf32>
    %c0_29 = arith.constant 0 : index
    %c0_30 = arith.constant 0 : index
    %47 = vector.load %arg3[%c0_29, %c0_30] : memref<16x1xf32, #tpu.memory_space<vmem>>, vector<16x1xf32>
    %cst_31 = arith.constant 9.99999974E-6 : f32
    %48 = vector.broadcast %cst_31 : f32 to vector<16x1xf32>
    %49 = arith.addf %46, %48 : vector<16x1xf32>
    %50 = math.rsqrt %49 : vector<16x1xf32>
    %51 = arith.mulf %47, %50 : vector<16x1xf32>
    %c0_32 = arith.constant 0 : index
    %c0_33 = arith.constant 0 : index
    %52 = vector.load %arg4[%c0_32, %c0_33] : memref<16x1xf32, #tpu.memory_space<vmem>>, vector<16x1xf32>
    %53 = arith.mulf %42, %51 : vector<16x1xf32>
    %54 = arith.subf %52, %53 : vector<16x1xf32>
    %55 = vector.broadcast %51 : vector<16x1xf32> to vector<16x128xf32>
    %56 = arith.mulf %17, %55 : vector<16x128xf32>
    %57 = vector.broadcast %54 : vector<16x1xf32> to vector<16x128xf32>
    %58 = arith.addf %56, %57 : vector<16x128xf32>
    %cst_34 = arith.constant 0.000000e+00 : f32
    %59 = vector.broadcast %cst_34 : f32 to vector<16x128xf32>
    %60 = arith.maximumf %58, %59 : vector<16x128xf32>
    %61 = vector.broadcast %51 : vector<16x1xf32> to vector<16x128xf32>
    %62 = arith.mulf %33, %61 : vector<16x128xf32>
    %63 = vector.broadcast %54 : vector<16x1xf32> to vector<16x128xf32>
    %64 = arith.addf %62, %63 : vector<16x128xf32>
    %cst_35 = arith.constant 0.000000e+00 : f32
    %65 = vector.broadcast %cst_35 : f32 to vector<16x128xf32>
    %66 = arith.maximumf %64, %65 : vector<16x128xf32>
    %c0_36 = arith.constant 0 : index
    %c0_37 = arith.constant 0 : index
    %c1_38 = arith.constant 1 : index
    %67 = vector.load %arg14[%c0_36, %c0_37, %c1_38] : memref<2x16x130xf32, #tpu.memory_space<vmem>>, vector<1x16x128xf32>
    %68 = vector.shape_cast %67 : vector<1x16x128xf32> to vector<16x128xf32>
    %69 = vector.shape_cast %60 : vector<16x128xf32> to vector<1x16x128xf32>
    tpu.vector_store %arg14[%c0_36, %c0_37, %c1_38], %69 {strides = array<i32>} : memref<2x16x130xf32, #tpu.memory_space<vmem>>, vector<1x16x128xf32>,
    %c1_39 = arith.constant 1 : index
    %c0_40 = arith.constant 0 : index
    %c1_41 = arith.constant 1 : index
    %70 = vector.load %arg14[%c1_39, %c0_40, %c1_41] : memref<2x16x130xf32, #tpu.memory_space<vmem>>, vector<1x16x128xf32>
    %71 = vector.shape_cast %70 : vector<1x16x128xf32> to vector<16x128xf32>
    %72 = vector.shape_cast %66 : vector<16x128xf32> to vector<1x16x128xf32>
    tpu.vector_store %arg14[%c1_39, %c0_40, %c1_41], %72 {strides = array<i32>} : memref<2x16x130xf32, #tpu.memory_space<vmem>>, vector<1x16x128xf32>,
    %c0_42 = arith.constant 0 : index
    %c0_43 = arith.constant 0 : index
    %73 = vector.load %arg5[%c0_42, %c0_43] : memref<16x48xf32, #tpu.memory_space<vmem>>, vector<16x48xf32>
    %c0_44 = arith.constant 0 : index
    %c0_45 = arith.constant 0 : index
    %74 = vector.load %arg6[%c0_44, %c0_45] : memref<16x1xf32, #tpu.memory_space<vmem>>, vector<16x1xf32>
    %cst_46 = arith.constant 0.000000e+00 : f32
    %75 = vector.broadcast %cst_46 : f32 to vector<16x1xf32>
    %cst_47 = arith.constant 0.000000e+00 : f32
    %76 = vector.broadcast %cst_47 : f32 to vector<16x1xf32>
    %c0_48 = arith.constant 0 : index
    %c0_49 = arith.constant 0 : index
    %c0_50 = arith.constant 0 : index
    %77 = vector.load %arg14[%c0_48, %c0_49, %c0_50] : memref<2x16x130xf32, #tpu.memory_space<vmem>>, vector<1x16x130xf32>
    %78 = vector.shape_cast %77 : vector<1x16x130xf32> to vector<16x130xf32>
    %79 = vector.extract_strided_slice %78 {offsets = [0, 0], sizes = [16, 128], strides = [1, 1]} : vector<16x130xf32> to vector<16x128xf32>
    %80 = vector.extract_strided_slice %78 {offsets = [0, 1], sizes = [16, 128], strides = [1, 1]} : vector<16x130xf32> to vector<16x128xf32>
    %81 = vector.extract_strided_slice %78 {offsets = [0, 2], sizes = [16, 128], strides = [1, 1]} : vector<16x130xf32> to vector<16x128xf32>
    %82 = tpu.concatenate %79, %80, %81 in 0 : vector<16x128xf32>, vector<16x128xf32>, vector<16x128xf32> -> vector<48x128xf32>
    %cst_51 = arith.constant dense<0.000000e+00> : vector<16x128xf32>
    %83 = tpu.matmul %73, %82, %cst_51 {dimension_numbers = #tpu.dot_dimension_numbers<[1], [0], [0], [1], [0, 0, 1, 1], [], []>} : vector<16x48xf32>, vector<48x128xf32>, vector<16x128xf32> -> vector<16x128xf32>
    %84 = vector.broadcast %74 : vector<16x1xf32> to vector<16x128xf32>
    %85 = arith.addf %83, %84 : vector<16x128xf32>
    %cst_52 = arith.constant dense<0.000000e+00> : vector<16xf32>
    %86 = vector.multi_reduction <add>, %85, %cst_52 [1] : vector<16x128xf32> to vector<16xf32>
    %87 = vector.shape_cast %86 : vector<16xf32> to vector<16x1xf32>
    %88 = arith.addf %75, %87 : vector<16x1xf32>
    %89 = arith.mulf %85, %85 : vector<16x128xf32>
    %cst_53 = arith.constant dense<0.000000e+00> : vector<16xf32>
    %90 = vector.multi_reduction <add>, %89, %cst_53 [1] : vector<16x128xf32> to vector<16xf32>
    %91 = vector.shape_cast %90 : vector<16xf32> to vector<16x1xf32>
    %92 = arith.addf %76, %91 : vector<16x1xf32>
    %c1_54 = arith.constant 1 : index
    %c0_55 = arith.constant 0 : index
    %c0_56 = arith.constant 0 : index
    %93 = vector.load %arg14[%c1_54, %c0_55, %c0_56] : memref<2x16x130xf32, #tpu.memory_space<vmem>>, vector<1x16x130xf32>
    %94 = vector.shape_cast %93 : vector<1x16x130xf32> to vector<16x130xf32>
    %95 = vector.extract_strided_slice %94 {offsets = [0, 0], sizes = [16, 128], strides = [1, 1]} : vector<16x130xf32> to vector<16x128xf32>
    %96 = vector.extract_strided_slice %94 {offsets = [0, 1], sizes = [16, 128], strides = [1, 1]} : vector<16x130xf32> to vector<16x128xf32>
    %97 = vector.extract_strided_slice %94 {offsets = [0, 2], sizes = [16, 128], strides = [1, 1]} : vector<16x130xf32> to vector<16x128xf32>
    %98 = tpu.concatenate %95, %96, %97 in 0 : vector<16x128xf32>, vector<16x128xf32>, vector<16x128xf32> -> vector<48x128xf32>
    %cst_57 = arith.constant dense<0.000000e+00> : vector<16x128xf32>
    %99 = tpu.matmul %73, %98, %cst_57 {dimension_numbers = #tpu.dot_dimension_numbers<[1], [0], [0], [1], [0, 0, 1, 1], [], []>} : vector<16x48xf32>, vector<48x128xf32>, vector<16x128xf32> -> vector<16x128xf32>
    %100 = vector.broadcast %74 : vector<16x1xf32> to vector<16x128xf32>
    %101 = arith.addf %99, %100 : vector<16x128xf32>
    %cst_58 = arith.constant dense<0.000000e+00> : vector<16xf32>
    %102 = vector.multi_reduction <add>, %101, %cst_58 [1] : vector<16x128xf32> to vector<16xf32>
    %103 = vector.shape_cast %102 : vector<16xf32> to vector<16x1xf32>
    %104 = arith.addf %88, %103 : vector<16x1xf32>
    %105 = arith.mulf %101, %101 : vector<16x128xf32>
    %cst_59 = arith.constant dense<0.000000e+00> : vector<16xf32>
    %106 = vector.multi_reduction <add>, %105, %cst_59 [1] : vector<16x128xf32> to vector<16xf32>
    %107 = vector.shape_cast %106 : vector<16xf32> to vector<16x1xf32>
    %108 = arith.addf %92, %107 : vector<16x1xf32>
    %cst_60 = arith.constant 3.906250e-03 : f32
    %109 = vector.broadcast %cst_60 : f32 to vector<16x1xf32>
    %110 = arith.mulf %104, %109 : vector<16x1xf32>
    %cst_61 = arith.constant 3.906250e-03 : f32
    %111 = vector.broadcast %cst_61 : f32 to vector<16x1xf32>
    %112 = arith.mulf %108, %111 : vector<16x1xf32>
    %113 = arith.mulf %110, %110 : vector<16x1xf32>
    %114 = arith.subf %112, %113 : vector<16x1xf32>
    %c0_62 = arith.constant 0 : index
    %c0_63 = arith.constant 0 : index
    %115 = vector.load %arg7[%c0_62, %c0_63] : memref<16x1xf32, #tpu.memory_space<vmem>>, vector<16x1xf32>
    %cst_64 = arith.constant 9.99999974E-6 : f32
    %116 = vector.broadcast %cst_64 : f32 to vector<16x1xf32>
    %117 = arith.addf %114, %116 : vector<16x1xf32>
    %118 = math.rsqrt %117 : vector<16x1xf32>
    %119 = arith.mulf %115, %118 : vector<16x1xf32>
    %c0_65 = arith.constant 0 : index
    %c0_66 = arith.constant 0 : index
    %120 = vector.load %arg8[%c0_65, %c0_66] : memref<16x1xf32, #tpu.memory_space<vmem>>, vector<16x1xf32>
    %121 = arith.mulf %110, %119 : vector<16x1xf32>
    %122 = arith.subf %120, %121 : vector<16x1xf32>
    %123 = vector.broadcast %119 : vector<16x1xf32> to vector<16x128xf32>
    %124 = arith.mulf %85, %123 : vector<16x128xf32>
    %125 = vector.broadcast %122 : vector<16x1xf32> to vector<16x128xf32>
    %126 = arith.addf %124, %125 : vector<16x128xf32>
    %cst_67 = arith.constant 0.000000e+00 : f32
    %127 = vector.broadcast %cst_67 : f32 to vector<16x128xf32>
    %128 = arith.maximumf %126, %127 : vector<16x128xf32>
    %129 = vector.broadcast %119 : vector<16x1xf32> to vector<16x128xf32>
    %130 = arith.mulf %101, %129 : vector<16x128xf32>
    %131 = vector.broadcast %122 : vector<16x1xf32> to vector<16x128xf32>
    %132 = arith.addf %130, %131 : vector<16x128xf32>
    %cst_68 = arith.constant 0.000000e+00 : f32
    %133 = vector.broadcast %cst_68 : f32 to vector<16x128xf32>
    %134 = arith.maximumf %132, %133 : vector<16x128xf32>
    %cst_69 = arith.constant dense<0.000000e+00> : vector<16xf32>
    %135 = vector.multi_reduction <add>, %128, %cst_69 [1] : vector<16x128xf32> to vector<16xf32>
    %136 = vector.shape_cast %135 : vector<16xf32> to vector<16x1xf32>
    %cst_70 = arith.constant dense<0.000000e+00> : vector<16xf32>
    %137 = vector.multi_reduction <add>, %134, %cst_70 [1] : vector<16x128xf32> to vector<16xf32>
    %138 = vector.shape_cast %137 : vector<16xf32> to vector<16x1xf32>
    %139 = tpu.concatenate %136, %138 in 1 : vector<16x1xf32>, vector<16x1xf32> -> vector<16x2xf32>
    %cst_71 = arith.constant 7.812500e-03 : f32
    %140 = vector.broadcast %cst_71 : f32 to vector<16x2xf32>
    %141 = arith.mulf %139, %140 : vector<16x2xf32>
    %c0_72 = arith.constant 0 : index
    %c0_73 = arith.constant 0 : index
    %142 = vector.load %arg9[%c0_72, %c0_73] : memref<2x16xf32, #tpu.memory_space<vmem>>, vector<2x16xf32>
    %cst_74 = arith.constant dense<0.000000e+00> : vector<2x2xf32>
    %143 = tpu.matmul %142, %141, %cst_74 {dimension_numbers = #tpu.dot_dimension_numbers<[1], [0], [0], [1], [0, 0, 1, 1], [], []>} : vector<2x16xf32>, vector<16x2xf32>, vector<2x2xf32> -> vector<2x2xf32>
    %c0_75 = arith.constant 0 : index
    %c0_76 = arith.constant 0 : index
    %144 = vector.load %arg10[%c0_75, %c0_76] : memref<2x1xf32, #tpu.memory_space<vmem>>, vector<2x1xf32>
    %145 = vector.broadcast %144 : vector<2x1xf32> to vector<2x2xf32>
    %146 = arith.addf %143, %145 : vector<2x2xf32>
    %cst_77 = arith.constant 0.000000e+00 : f32
    %147 = vector.broadcast %cst_77 : f32 to vector<2x2xf32>
    %148 = arith.maximumf %146, %147 : vector<2x2xf32>
    %c0_78 = arith.constant 0 : index
    %c0_79 = arith.constant 0 : index
    %149 = vector.load %arg11[%c0_78, %c0_79] : memref<16x2xf32, #tpu.memory_space<vmem>>, vector<16x2xf32>
    %cst_80 = arith.constant dense<0.000000e+00> : vector<16x2xf32>
    %150 = tpu.matmul %149, %148, %cst_80 {dimension_numbers = #tpu.dot_dimension_numbers<[1], [0], [0], [1], [0, 0, 1, 1], [], []>} : vector<16x2xf32>, vector<2x2xf32>, vector<16x2xf32> -> vector<16x2xf32>
    %c0_81 = arith.constant 0 : index
    %c0_82 = arith.constant 0 : index
    %151 = vector.load %arg12[%c0_81, %c0_82] : memref<16x1xf32, #tpu.memory_space<vmem>>, vector<16x1xf32>
    %152 = vector.broadcast %151 : vector<16x1xf32> to vector<16x2xf32>
    %153 = arith.addf %150, %152 : vector<16x2xf32>
    %cst_83 = arith.constant 0.000000e+00 : f32
    %154 = vector.broadcast %cst_83 : f32 to vector<16x2xf32>
    %155 = arith.subf %154, %153 : vector<16x2xf32>
    %156 = math.exp %155 : vector<16x2xf32>
    %cst_84 = arith.constant 1.000000e+00 : f32
    %157 = vector.broadcast %cst_84 : f32 to vector<16x2xf32>
    %158 = arith.addf %157, %156 : vector<16x2xf32>
    %159 = tpu.reciprocal %158 : vector<16x2xf32> -> vector<16x2xf32>
    %c0_85 = arith.constant 0 : index
    %c0_86 = arith.constant 0 : index
    %c0_87 = arith.constant 0 : index
    %160 = vector.load %arg0[%c0_85, %c0_86, %c0_87] : memref<2x16x128xf32, #tpu.memory_space<vmem>>, vector<1x16x128xf32>
    %161 = vector.shape_cast %160 : vector<1x16x128xf32> to vector<16x128xf32>
    %162 = arith.addf %161, %128 : vector<16x128xf32>
    %163 = vector.extract_strided_slice %159 {offsets = [0, 0], sizes = [16, 1], strides = [1, 1]} : vector<16x2xf32> to vector<16x1xf32>
    %164 = vector.broadcast %163 : vector<16x1xf32> to vector<16x128xf32>
    %165 = arith.addf %162, %164 : vector<16x128xf32>
    %c0_88 = arith.constant 0 : index
    %c0_89 = arith.constant 0 : index
    %c0_90 = arith.constant 0 : index
    %166 = vector.load %arg13[%c0_88, %c0_89, %c0_90] : memref<2x16x128xf32, #tpu.memory_space<vmem>>, vector<1x16x128xf32>
    %167 = vector.shape_cast %166 : vector<1x16x128xf32> to vector<16x128xf32>
    %168 = vector.shape_cast %165 : vector<16x128xf32> to vector<1x16x128xf32>
    tpu.vector_store %arg13[%c0_88, %c0_89, %c0_90], %168 {strides = array<i32>} : memref<2x16x128xf32, #tpu.memory_space<vmem>>, vector<1x16x128xf32>,
    %c1_91 = arith.constant 1 : index
    %c0_92 = arith.constant 0 : index
    %c0_93 = arith.constant 0 : index
    %169 = vector.load %arg0[%c1_91, %c0_92, %c0_93] : memref<2x16x128xf32, #tpu.memory_space<vmem>>, vector<1x16x128xf32>
    %170 = vector.shape_cast %169 : vector<1x16x128xf32> to vector<16x128xf32>
    %171 = arith.addf %170, %134 : vector<16x128xf32>
    %172 = vector.extract_strided_slice %159 {offsets = [0, 1], sizes = [16, 1], strides = [1, 1]} : vector<16x2xf32> to vector<16x1xf32>
    %173 = vector.broadcast %172 : vector<16x1xf32> to vector<16x128xf32>
    %174 = arith.addf %171, %173 : vector<16x128xf32>
    %c1_94 = arith.constant 1 : index
    %c0_95 = arith.constant 0 : index
    %c0_96 = arith.constant 0 : index
    %175 = vector.load %arg13[%c1_94, %c0_95, %c0_96] : memref<2x16x128xf32, #tpu.memory_space<vmem>>, vector<1x16x128xf32>
    %176 = vector.shape_cast %175 : vector<1x16x128xf32> to vector<16x128xf32>
    %177 = vector.shape_cast %174 : vector<16x128xf32> to vector<1x16x128xf32>
    tpu.vector_store %arg13[%c1_94, %c0_95, %c0_96], %177 {strides = array<i32>} : memref<2x16x128xf32, #tpu.memory_space<vmem>>, vector<1x16x128xf32>,
    return
  }
}

</mosaic_0001>

<bundles_post_ra>
// kernel: tpu_custom_call.1
= control target key start
LH: loop header
LB: loop body
LE: loop exit
PB: predicated region body
PF: predicated region fallthrough
CT: control target
= control target key end

     0   :  { %s906_s29 = smov 1   ;;  %s1244_s0 = inlined_call_operand.vmem [shape: f32[2,16,128], index: 0, kind: input, shape index: {}]   ;;  %s1245_s1 = inlined_call_operand.vmem [shape: f32[16,48], index: 1, kind: input, shape index: {}]   ;;  %s1246_s2 = inlined_call_operand.vmem [shape: f32[16,1], index: 2, kind: input, shape index: {}]   ;;  %s1247_s3 = inlined_call_operand.vmem [shape: f32[16,1], index: 3, kind: input, shape index: {}]   ;;  %s1248_s4 = inlined_call_operand.vmem [shape: f32[16,1], index: 4, kind: input, shape index: {}]   ;;  %s1249_s5 = inlined_call_operand.vmem [shape: f32[16,48], index: 5, kind: input, shape index: {}]   ;;  %s1250_s6 = inlined_call_operand.vmem [shape: f32[16,1], index: 6, kind: input, shape index: {}]   ;;  %s1251_s7 = inlined_call_operand.vmem [shape: f32[16,1], index: 7, kind: input, shape index: {}]   ;;  %s1252_s8 = inlined_call_operand.vmem [shape: f32[16,1], index: 8, kind: input, shape index: {}]   ;;  %s1253_s9 = inlined_call_operand.vmem [shape: f32[2,16], index: 9, kind: input, shape index: {}]   ;;  %s1254_s10 = inlined_call_operand.vmem [shape: f32[2,1], index: 10, kind: input, shape index: {}]   ;;  %s1255_s11 = inlined_call_operand.vmem [shape: f32[16,2], index: 11, kind: input, shape index: {}]   ;;  %s1256_s12 = inlined_call_operand.vmem [shape: f32[16,1], index: 12, kind: input, shape index: {}]   ;;  %s1257_s13 = inlined_call_operand.hbm [shape: f32[2,16,128], index: 13, kind: output, shape index: {}]  }
   0x1   :  { %v988_v0 = vld [vmem:[%s1244_s0 + $0x8] sm:$0xff]  ;;  %v993_v1 = vld [vmem:[%s1244_s0] sm:$0xff] }
   0x2   :  { %65 = vrot.lane.b32.xlu0 %v988_v0, %s906_s29  ;;  %63 = vrot.lane.b32.xlu1 %v993_v1, %s906_s29 }
   0x3   :  { %18 = vsyncpa [#allocation4], 0  ;;  %v1002_v2 = vld [vmem:[%s1244_s0 + $0x18] sm:$0xff]  ;;  %v1007_v3 = vld [vmem:[%s1244_s0 + $0x10] sm:$0xff]  ;;  %vm45_vm0 = vcmask 7168   ;;  %vm50_vm1 = vcmask 15368  }
   0x4   :  { %v907_v4 = vmov 0.0   ;;  %vm75_vm2 = vcmask 1047560   ;;  %s908_s0 = smov 126   ;;  %s909_s17 = smov 127   ;;  %vm117_vm3 = vcmask 1031168   ;;  %v86_v35 = vld [vmem:[%s1246_s2] sm:$0xff] }
   0x5   :  { %47 = vst.msk [vmem:[#allocation2 + $0x10] sm:$0xff] %vm45_vm0, %v907_v4  ;;  %v87_v36 = vld [vmem:[%s1246_s2 + $0x8] sm:$0xff]  ;;  %vm104_vm4 = vcmask 1039360   ;;  %v910_v37 = vmov 0   ;;  %v84_v55 = vld [vmem:[%s1245_s1] sm:$0xff]  ;;  %vm132_vm5 = vcmask 392192  }
   0x6   :  { %52 = vst.msk [vmem:[#allocation2 + $0x18] sm:$0xff] %vm50_vm1, %v907_v4  ;;  %819 = vset.pattern.permute.xlu1 %v910_v37  ;;  %818 = vset.pattern.permute.xlu0 %v910_v37  ;;  %v85_v57 = vld [vmem:[%s1245_s1 + $0x8] sm:$0xff]  ;;  %s913_s16 = smov 128  }
   0x7   :  { %46 = vst.msk [vmem:[#allocation2] sm:$0xff] %vm45_vm0, %v907_v4  ;;  %820 = vset.pattern.permute.xlu2 %v910_v37 }
   0x8   :  { %48 = vst.msk [vmem:[#allocation2 + $0x20] sm:$0xff] %vm45_vm0, %v907_v4 }
   0x9   :  { %49 = vst.msk [vmem:[#allocation2 + $0x30] sm:$0xff] %vm45_vm0, %v907_v4 }
   0xa   :  { %69 = vrot.lane.b32.xlu0 %v1002_v2, %s906_s29  ;;  %67 = vrot.lane.b32.xlu1 %v1007_v3, %s906_s29  ;;  %51 = vst.msk [vmem:[#allocation2 + $0x8] sm:$0xff] %vm50_vm1, %v907_v4 }
   0xb   :  { %53 = vst.msk [vmem:[#allocation2 + $0x28] sm:$0xff] %vm50_vm1, %v907_v4 }
   0xc   :  { %54 = vst.msk [vmem:[#allocation2 + $0x38] sm:$0xff] %vm50_vm1, %v907_v4 }
  0x74   :  { %v66_v5 = vpop.permute.xlu0 %65  ;;  %v64_v6 = vpop.permute.xlu1 %63 }
  0x75   :  { %78 = vst.msk [vmem:[#allocation2 + $0x10] sm:$0xff] %vm75_vm2, %v66_v5 }
  0x76   :  { %79 = vst.msk [vmem:[#allocation2 + $0x18] sm:$0xff] %vm45_vm0, %v66_v5 }
  0x77   :  { %76 = vst.msk [vmem:[#allocation2] sm:$0xff] %vm75_vm2, %v64_v6 }
  0x78   :  { %77 = vst.msk [vmem:[#allocation2 + $0x8] sm:$0xff] %vm45_vm0, %v64_v6 }
  0x7c   :  { %v70_v7 = vpop.permute.xlu0 %69  ;;  %v68_v8 = vpop.permute.xlu1 %67  ;;  %v1021_v9 = vld [vmem:[#allocation2 + $0x10] sm:$0xff] }
  0x7d   :  { %82 = vst.msk [vmem:[#allocation2 + $0x30] sm:$0xff] %vm75_vm2, %v70_v7  ;;  %v91_v10 = vld [vmem:[#allocation2 + $0x18] sm:$0xff] }
  0x7e   :  { %83 = vst.msk [vmem:[#allocation2 + $0x38] sm:$0xff] %vm45_vm0, %v70_v7  ;;  %v778_v11 = vpack.i.bf16 %v91_v10, %v1021_v9  ;;  %v1026_v12 = vld [vmem:[#allocation2] sm:$0xff] }
  0x7f   :  { %80 = vst.msk [vmem:[#allocation2 + $0x20] sm:$0xff] %vm75_vm2, %v68_v8  ;;  %v89_v13 = vld [vmem:[#allocation2 + $0x8] sm:$0xff] }
  0x80   :  { %81 = vst.msk [vmem:[#allocation2 + $0x28] sm:$0xff] %vm45_vm0, %v68_v8  ;;  %779 = vrot.lane.b32.xlu2 %v778_v11, %s908_s0  ;;  %v788_v14 = vpack.i.bf16 %v89_v13, %v1026_v12 }
  0x82   :  { %789 = vrot.lane.b32.xlu0 %v788_v14, %s908_s0 }
  0x84   :  { %v179_v15 = vld [vmem:[#allocation2 + $0x30] sm:$0xff] }
  0x85   :  { %v180_v16 = vld [vmem:[#allocation2 + $0x38] sm:$0xff] }
  0x86   :  { %v1033_v17 = vld [vmem:[#allocation2 + $0x20] sm:$0xff]  ;;  %v783_v18 = vpack.i.bf16 %v180_v16, %v179_v15 }
  0x87   :  { %v178_v19 = vld [vmem:[#allocation2 + $0x28] sm:$0xff] }
  0x88   :  { %v793_v20 = vpack.i.bf16 %v178_v19, %v1033_v17  ;;  %784 = vrot.lane.b32.xlu2 %v783_v18, %s908_s0 }
  0x8a   :  { %794 = vrot.lane.b32.xlu1 %v793_v20, %s908_s0  ;;  %804 = vrot.lane.b32.xlu0 %v783_v18, %s909_s17 }
  0x90   :  { %799 = vrot.lane.b32.xlu2 %v778_v11, %s909_s17 }
  0x92   :  { %809 = vrot.lane.b32.xlu1 %v788_v14, %s909_s17  ;;  %129 = vperm.xlu0 %818, %v87_v36  }
  0x98   :  { %814 = vrot.lane.b32.xlu2 %v793_v20, %s909_s17 }
  0x9a   :  { %124 = vperm.xlu1 %819, %v86_v35  }
  0xda   :  { %v780_v21 = vpop.permute.xlu2 %779 }
  0xdb   :  { %v782_v22 = vunpack.i.h.bf16 %v780_v21  ;;  %v781_v23 = vunpack.i.l.bf16 %v780_v21 }
  0xdd   :  { %v119_v24 = vsel %vm117_vm3, %v781_v23, %v782_v22 }
  0xde   :  { %149 = vmatpush.msra.mxu0 %v119_v24 }
  0xe2   :  { %v785_v25 = vpop.permute.xlu2 %784 }
  0xe3   :  { %v787_v26 = vunpack.i.h.bf16 %v785_v25  ;;  %v786_v27 = vunpack.i.l.bf16 %v785_v25 }
  0xe5   :  { %v206_v28 = vsel %vm117_vm3, %v786_v27, %v787_v26 }
  0xe6   :  { %219 = vmatpush.msra.mxu1 %v206_v28 }
  0xea   :  { %v800_v29 = vpop.permute.xlu2 %799 }
  0xeb   :  { %v802_v30 = vunpack.i.h.bf16 %v800_v29  ;;  %v801_v32 = vunpack.i.l.bf16 %v800_v29 }
  0xed   :  { %v106_v39 = vsel %vm104_vm4, %v801_v32, %v802_v30 }
  0xf2   :  { %v815_v40 = vpop.permute.xlu2 %814 }
  0xf3   :  { %v817_v47 = vunpack.i.h.bf16 %v815_v40  ;;  %v816_v48 = vunpack.i.l.bf16 %v815_v40 }
  0xf4   :  { %v790_v31 = vpop.permute.xlu0 %789 }
  0xf5   :  { %v792_v33 = vunpack.i.h.bf16 %v790_v31  ;;  %v791_v34 = vunpack.i.l.bf16 %v790_v31  ;;  %v193_v51 = vsel %vm104_vm4, %v816_v48, %v817_v47  ;;  %v281_v47 = vld [vmem:[%s1248_s4 + $0x8] sm:$0xff] }
  0xf7   :  { %v118_v38 = vsel %vm117_vm3, %v791_v34, %v792_v33 }
  0xf8   :  { %150 = vmatpush.msra.mxu0 %v118_v38 }
  0xfa   :  { %151 = vmatpush.msra.mxu0 %v106_v39 }
  0xfc   :  { %v795_v41 = vpop.permute.xlu1 %794  ;;  %v805_v42 = vpop.permute.xlu0 %804 }
  0xfd   :  { %v797_v43 = vunpack.i.h.bf16 %v795_v41  ;;  %v796_v44 = vunpack.i.l.bf16 %v795_v41  ;;  %v807_v45 = vunpack.i.h.bf16 %v805_v42  ;;  %v806_v46 = vunpack.i.l.bf16 %v805_v42  ;;  %v255_v41 = vld [vmem:[%s1247_s3 + $0x8] sm:$0xff] }
  0xff   :  { %v205_v49 = vsel %vm117_vm3, %v796_v44, %v797_v43  ;;  %v194_v50 = vsel %vm104_vm4, %v806_v46, %v807_v45 }
 0x100   :  { %220 = vmatpush.msra.mxu1 %v205_v49 }
 0x102   :  { %221 = vmatpush.msra.mxu1 %v194_v50 }
 0x104   :  { %v810_v52 = vpop.permute.xlu1 %809  ;;  %222 = vmatpush.msra.mxu1 %v193_v51  ;;  %v130_v63 = vpop.permute.xlu0 %129  ;;  %v254_v51 = vld [vmem:[%s1247_s3] sm:$0xff] }
 0x105   :  { %v812_v53 = vunpack.i.h.bf16 %v810_v52  ;;  %v811_v54 = vunpack.i.l.bf16 %v810_v52 }
 0x106   :  { %223 = vmatpush.msra.mxu1 %v179_v15 }
 0x107   :  { %v105_v56 = vsel %vm104_vm4, %v811_v54, %v812_v53 }
 0x108   :  { %152 = vmatpush.msra.mxu0 %v105_v56  ;;  %224 = vmatpush.msra.mxu1 %v1033_v17 }
 0x109   :  { %756 = vmatmul.msk.f32.vlgmr.msra.gmra.mxu1 %vm132_vm5, %v84_v55 }
 0x10a   :  { %153 = vmatpush.msra.mxu0 %v1021_v9 }
 0x10c   :  { %154 = vmatpush.msra.mxu0 %v1026_v12  ;;  %v125_v58 = vpop.permute.xlu1 %124 }
 0x10d   :  { %754 = vmatmul.msk.f32.vlgmr.msra.gmra.mxu0 %vm132_vm5, %v84_v55  ;;  %v280_v55 = vld [vmem:[%s1248_s4] sm:$0xff] }
 0x111   :  { %757 = vmatmul.msk.f32.gmra.mxu1 %vm132_vm5, %v85_v57 }
 0x115   :  { %755 = vmatmul.msk.f32.gmra.mxu0 %vm132_vm5, %v85_v57 }
 0x186   :  { %v226_v59 = vpop.f32.mrf.mxu1 }
 0x187   :  { %v1069_v60 = vadd.f32 %v226_v59, %v125_v58 }
 0x189   :  { %232 = vadd.xlane.f32.xlu2 %v1069_v60  ;;  %v238_v8 = vmul.f32 %v1069_v60, %v1069_v60 }
 0x18a   :  { %v156_v61 = vpop.f32.mrf.mxu0 }
 0x18b   :  { %v1072_v62 = vadd.f32 %v156_v61, %v125_v58 }
 0x18d   :  { %162 = vadd.xlane.f32.xlu0 %v1072_v62  ;;  %v168_v11 = vmul.f32 %v1072_v62, %v1072_v62 }
 0x18e   :  { %v229_v4 = vpop.f32.mrf.mxu1 }
 0x18f   :  { %v1075_v5 = vadd.f32 %v229_v4, %v130_v63 }
 0x191   :  { %234 = vadd.xlane.f32.xlu1 %v1075_v5  ;;  %v239_v9 = vmul.f32 %v1075_v5, %v1075_v5 }
 0x192   :  { %v159_v6 = vpop.f32.mrf.mxu0 }
 0x193   :  { %v1078_v7 = vadd.f32 %v159_v6, %v130_v63 }
 0x195   :  { %164 = vadd.xlane.f32.xlu2 %v1078_v7  ;;  %240 = vadd.xlane.f32.xlu0 %v238_v8  ;;  %v169_v10 = vmul.f32 %v1078_v7, %v1078_v7 }
 0x199   :  { %242 = vadd.xlane.f32.xlu1 %v239_v9 }
 0x19d   :  { %172 = vadd.xlane.f32.xlu2 %v169_v10 }
 0x1a5   :  { %170 = vadd.xlane.f32.xlu2 %v168_v11 }
 0x1fc   :  { %v233_v12 = vpop.xlane.xlu2 %232 }
 0x200   :  { %v163_v16 = vpop.xlane.xlu0 %162 }
 0x201   :  { %v236_v21 = vadd.f32 %v233_v12, %v163_v16 }
 0x203   :  { %v246_v25 = vmul.f32 0.00390625, %v236_v21 }
 0x204   :  { %v235_v13 = vpop.xlane.xlu1 %234 }
 0x205   :  { %v250_v30 = vmul.f32 %v246_v25, %v246_v25 }
 0x208   :  { %v165_v14 = vpop.xlane.xlu2 %164  ;;  %v241_v27 = vpop.xlane.xlu0 %240 }
 0x209   :  { %v237_v15 = vadd.f32 %v235_v13, %v165_v14 }
 0x20b   :  { %v247_v17 = vmul.f32 0.00390625, %v237_v15 }
 0x20c   :  { %v243_v18 = vpop.xlane.xlu1 %242 }
 0x20d   :  { %v251_v22 = vmul.f32 %v247_v17, %v247_v17 }
 0x210   :  { %v173_v19 = vpop.xlane.xlu2 %172 }
 0x211   :  { %v245_v20 = vadd.f32 %v243_v18, %v173_v19 }
 0x213   :  { %v249_v23 = vmul.f32 0.00390625, %v245_v20 }
 0x215   :  { %v253_v24 = vsub.f32 %v249_v23, %v251_v22 }
 0x217   :  { %v257_v26 = vadd.f32 1e-05, %v253_v24 }
 0x218   :  { %v171_v28 = vpop.xlane.xlu2 %170 }
 0x219   :  { %864 = vrsqrt.f32 %v257_v26  ;;  %v244_v29 = vadd.f32 %v241_v27, %v171_v28  ;;  %vm274_vm7 = vweird.f32 %v257_v26 }
 0x21b   :  { %v248_v31 = vmul.f32 0.00390625, %v244_v29 }
 0x21d   :  { %v252_v32 = vsub.f32 %v248_v31, %v250_v30  ;;  %v345_v30 = vld [vmem:[%s1250_s6 + $0x8] sm:$0xff]  ;;  %v344_v31 = vld [vmem:[%s1250_s6] sm:$0xff]  ;;  %s914_s6 = smov 8  }
 0x21f   :  { %v865_v33 = vpop.eup %864  ;;  %v256_v34 = vadd.f32 1e-05, %v252_v32 }
 0x220   :  { %v269_v35 = vmul.f32 %v865_v33, %v257_v26  ;;  %vm275_vm6 = vweird.f32 %v865_v33 }
 0x221   :  { %866 = vrsqrt.f32 %v256_v34  ;;  %vm276_vm8 = vmor %vm274_vm7, %vm275_vm6  ;;  %vm264_vm10 = vweird.f32 %v256_v34 }
 0x222   :  { %v270_v36 = vmul.f32 %v865_v33, %v269_v35 }
 0x224   :  { %v271_v37 = vmul.f32 0.5, %v270_v36 }
 0x226   :  { %v272_v38 = vsub.f32 1.5, %v271_v37 }
 0x227   :  { %v867_v39 = vpop.eup %866 }
 0x228   :  { %v259_v40 = vmul.f32 %v867_v39, %v256_v34  ;;  %v273_v42 = vmul.f32 %v865_v33, %v272_v38  ;;  %vm265_vm9 = vweird.f32 %v867_v39 }
 0x229   :  { %vm266_vm11 = vmor %vm264_vm10, %vm265_vm9 }
 0x22a   :  { %v260_v43 = vmul.f32 %v867_v39, %v259_v40  ;;  %v277_v44 = vsel %vm276_vm8, %v865_v33, %v273_v42 }
 0x22b   :  { %v279_v45 = vmul.f32 %v277_v44, %v255_v41 }
 0x22c   :  { %v261_v46 = vmul.f32 0.5, %v260_v43 }
 0x22d   :  { %293 = vperm.xlu1 %819, %v279_v45   ;;  %v283_v48 = vmul.f32 %v279_v45, %v247_v17 }
 0x22e   :  { %v262_v49 = vsub.f32 1.5, %v261_v46 }
 0x22f   :  { %v285_v50 = vsub.f32 %v281_v47, %v283_v48 }
 0x230   :  { %v263_v52 = vmul.f32 %v867_v39, %v262_v49 }
 0x231   :  { %305 = vperm.xlu0 %818, %v285_v50  }
 0x232   :  { %v267_v53 = vsel %vm266_vm11, %v867_v39, %v263_v52 }
 0x233   :  { %v278_v54 = vmul.f32 %v267_v53, %v254_v51 }
 0x235   :  { %288 = vperm.xlu2 %820, %v278_v54   ;;  %v282_v56 = vmul.f32 %v278_v54, %v246_v25 }
 0x237   :  { %v284_v57 = vsub.f32 %v280_v55, %v282_v56 }
 0x239   :  { %300 = vperm.xlu1 %819, %v284_v57  }
 0x28f   :  { %v289_v10 = vpop.permute.xlu2 %288 }
 0x290   :  { %v296_v11 = vmul.f32 %v289_v10, %v1072_v62  ;;  %v312_v12 = vmul.f32 %v289_v10, %v1069_v60 }
 0x29f   :  { %v294_v58 = vpop.permute.xlu1 %293 }
 0x2a0   :  { %v297_v59 = vmul.f32 %v294_v58, %v1078_v7  ;;  %v313_v61 = vmul.f32 %v294_v58, %v1075_v5 }
 0x2a3   :  { %v306_v63 = vpop.permute.xlu0 %305 }
 0x2a4   :  { %v309_v4 = vadd.f32 %v306_v63, %v297_v59  ;;  %v315_v6 = vadd.f32 %v313_v61, %v306_v63 }
 0x2a6   :  { %v311_v8 = vmax.f32 %v309_v4, 0.0  ;;  %v317_v9 = vmax.f32 %v315_v6, 0.0  ;;  %v342_v4 = vld [vmem:[%s1249_s5] sm:$0xff] }
 0x2a8   :  { %322 = vrot.lane.b32.xlu0 %v311_v8, %s906_s29  ;;  %334 = vrot.lane.b32.xlu2 %v317_v9, %s906_s29  ;;  %v343_v9 = vld [vmem:[%s1249_s5 + $0x8] sm:$0xff] }
 0x2ab   :  { %v301_v13 = vpop.permute.xlu1 %300 }
 0x2ac   :  { %v308_v14 = vadd.f32 %v301_v13, %v296_v11  ;;  %v314_v15 = vadd.f32 %v312_v12, %v301_v13 }
 0x2ae   :  { %v310_v7 = vmax.f32 %v308_v14, 0.0  ;;  %v316_v16 = vmax.f32 %v314_v15, 0.0 }
 0x2b0   :  { %320 = vrot.lane.b32.xlu1 %v310_v7, %s906_s29  ;;  %332 = vrot.lane.b32.xlu0 %v316_v16, %s906_s29  ;;  %s742_s29 = sshll.u32 %s1257_s13, 4  ;;  %s743_s29 = int_to_ptr.hbm [resolvable:$true] %s742_s29 }
 0x302   :  { %v335_v5 = vpop.permute.xlu2 %334 }
 0x303   :  { %340 = vst.msk [vmem:[#allocation2 + $0x30] sm:$0xff] %vm75_vm2, %v335_v5 }
 0x304   :  { %341 = vst.msk [vmem:[#allocation2 + $0x38] sm:$0xff] %vm45_vm0, %v335_v5 }
 0x30a   :  { %v1111_v17 = vld [vmem:[#allocation2 + $0x30] sm:$0xff] }
 0x30b   :  { %v434_v18 = vld [vmem:[#allocation2 + $0x38] sm:$0xff] }
 0x30c   :  { %v836_v62 = vpack.i.bf16 %v434_v18, %v1111_v17 }
 0x30e   :  { %837 = vrot.lane.b32.xlu1 %v836_v62, %s908_s0 }
 0x31a   :  { %v323_v60 = vpop.permute.xlu0 %322 }
 0x31b   :  { %328 = vst.msk [vmem:[#allocation2 + $0x10] sm:$0xff] %vm75_vm2, %v323_v60 }
 0x31c   :  { %329 = vst.msk [vmem:[#allocation2 + $0x18] sm:$0xff] %vm45_vm0, %v323_v60 }
 0x322   :  { %v321_v19 = vpop.permute.xlu1 %320  ;;  %v333_v20 = vpop.permute.xlu0 %332  ;;  %v348_v21 = vld [vmem:[#allocation2 + $0x10] sm:$0xff] }
 0x323   :  { %326 = vst.msk [vmem:[#allocation2] sm:$0xff] %vm75_vm2, %v321_v19  ;;  %v349_v22 = vld [vmem:[#allocation2 + $0x18] sm:$0xff] }
 0x324   :  { %327 = vst.msk [vmem:[#allocation2 + $0x8] sm:$0xff] %vm45_vm0, %v321_v19  ;;  %v841_v23 = vpack.i.bf16 %v349_v22, %v348_v21 }
 0x325   :  { %338 = vst.msk [vmem:[#allocation2 + $0x20] sm:$0xff] %vm75_vm2, %v333_v20 }
 0x326   :  { %339 = vst.msk [vmem:[#allocation2 + $0x28] sm:$0xff] %vm45_vm0, %v333_v20  ;;  %842 = vrot.lane.b32.xlu1 %v841_v23, %s909_s17 }
 0x32a   :  { %v346_v24 = vld [vmem:[#allocation2] sm:$0xff] }
 0x32b   :  { %v347_v25 = vld [vmem:[#allocation2 + $0x8] sm:$0xff] }
 0x32c   :  { %v821_v26 = vpack.i.bf16 %v347_v25, %v346_v24  ;;  %v431_v27 = vld [vmem:[#allocation2 + $0x20] sm:$0xff] }
 0x32d   :  { %v432_v28 = vld [vmem:[#allocation2 + $0x28] sm:$0xff] }
 0x32e   :  { %822 = vrot.lane.b32.xlu0 %v821_v26, %s908_s0  ;;  %v856_v29 = vpack.i.bf16 %v432_v28, %v431_v27 }
 0x330   :  { %857 = vrot.lane.b32.xlu1 %v856_v29, %s909_s17  ;;  %827 = vrot.lane.b32.xlu2 %v856_v29, %s908_s0 }
 0x336   :  { %847 = vrot.lane.b32.xlu0 %v836_v62, %s909_s17 }
 0x338   :  { %832 = vrot.lane.b32.xlu2 %v841_v23, %s908_s0 }
 0x33e   :  { %385 = vperm.xlu0 %818, %v345_v30  }
 0x340   :  { %852 = vrot.lane.b32.xlu2 %v821_v26, %s909_s17 }
 0x348   :  { %380 = vperm.xlu2 %820, %v344_v31  }
 0x380   :  { %v838_v32 = vpop.permute.xlu1 %837 }
 0x381   :  { %v840_v33 = vunpack.i.h.bf16 %v838_v32  ;;  %v839_v34 = vunpack.i.l.bf16 %v838_v32 }
 0x383   :  { %v460_v35 = vsel %vm117_vm3, %v839_v34, %v840_v33 }
 0x384   :  { %473 = vmatpush.msra.mxu3 %v460_v35 }
 0x38a   :  { %v828_v36 = vpop.permute.xlu2 %827 }
 0x38b   :  { %v830_v37 = vunpack.i.h.bf16 %v828_v36  ;;  %v829_v38 = vunpack.i.l.bf16 %v828_v36 }
 0x38d   :  { %v459_v39 = vsel %vm117_vm3, %v829_v38, %v830_v37 }
 0x38e   :  { %474 = vmatpush.msra.mxu3 %v459_v39 }
 0x392   :  { %v833_v40 = vpop.permute.xlu2 %832 }
 0x393   :  { %v835_v41 = vunpack.i.h.bf16 %v833_v40  ;;  %v834_v42 = vunpack.i.l.bf16 %v833_v40 }
 0x395   :  { %v375_v43 = vsel %vm117_vm3, %v834_v42, %v835_v41 }
 0x396   :  { %404 = vmatpush.msra.mxu2 %v375_v43 }
 0x398   :  { %v843_v44 = vpop.permute.xlu1 %842 }
 0x399   :  { %v845_v47 = vunpack.i.h.bf16 %v843_v44  ;;  %v844_v48 = vunpack.i.l.bf16 %v843_v44 }
 0x39a   :  { %v853_v45 = vpop.permute.xlu2 %852 }
 0x39b   :  { %v855_v51 = vunpack.i.h.bf16 %v853_v45  ;;  %v854_v52 = vunpack.i.l.bf16 %v853_v45  ;;  %v363_v54 = vsel %vm104_vm4, %v844_v48, %v845_v47 }
 0x39d   :  { %v362_v56 = vsel %vm104_vm4, %v854_v52, %v855_v51 }
 0x3a0   :  { %v823_v46 = vpop.permute.xlu0 %822 }
 0x3a1   :  { %v825_v49 = vunpack.i.h.bf16 %v823_v46  ;;  %v824_v50 = vunpack.i.l.bf16 %v823_v46 }
 0x3a2   :  { %v858_v55 = vpop.permute.xlu1 %857  ;;  %v381_v10 = vpop.permute.xlu2 %380 }
 0x3a3   :  { %v374_v53 = vsel %vm117_vm3, %v824_v50, %v825_v49  ;;  %v860_v58 = vunpack.i.h.bf16 %v858_v55  ;;  %v859_v59 = vunpack.i.l.bf16 %v858_v55  ;;  %v509_v49 = vld [vmem:[%s1251_s7 + $0x8] sm:$0xff]  ;;  %vm591_vm3 = vcmask 130048  }
 0x3a4   :  { %405 = vmatpush.msra.mxu2 %v374_v53  ;;  %v535_v55 = vld [vmem:[%s1252_s8 + $0x8] sm:$0xff] }
 0x3a5   :  { %v447_v8 = vsel %vm104_vm4, %v859_v59, %v860_v58  ;;  %v508_v59 = vld [vmem:[%s1251_s7] sm:$0xff] }
 0x3a6   :  { %406 = vmatpush.msra.mxu2 %v363_v54 }
 0x3a8   :  { %v848_v57 = vpop.permute.xlu0 %847  ;;  %407 = vmatpush.msra.mxu2 %v362_v56 }
 0x3a9   :  { %v850_v61 = vunpack.i.h.bf16 %v848_v57  ;;  %v849_v63 = vunpack.i.l.bf16 %v848_v57 }
 0x3aa   :  { %408 = vmatpush.msra.mxu2 %v348_v21 }
 0x3ab   :  { %v448_v6 = vsel %vm104_vm4, %v849_v63, %v850_v61  ;;  %vm637_vm4 = vcmask 1041408  }
 0x3ac   :  { %409 = vmatpush.msra.mxu2 %v346_v24  ;;  %475 = vmatpush.msra.mxu3 %v448_v6  ;;  %v534_v6 = vld [vmem:[%s1252_s8] sm:$0xff] }
 0x3ad   :  { %758 = vmatmul.msk.f32.vlgmr.msra.gmra.mxu2 %vm132_vm5, %v342_v4 }
 0x3ae   :  { %476 = vmatpush.msra.mxu3 %v447_v8 }
 0x3b0   :  { %477 = vmatpush.msra.mxu3 %v1111_v17  ;;  %v386_v15 = vpop.permute.xlu0 %385 }
 0x3b2   :  { %478 = vmatpush.msra.mxu3 %v431_v27 }
 0x3b3   :  { %760 = vmatmul.msk.f32.vlgmr.msra.gmra.mxu3 %vm132_vm5, %v342_v4 }
 0x3b5   :  { %759 = vmatmul.msk.f32.gmra.mxu2 %vm132_vm5, %v343_v9 }
 0x3bb   :  { %761 = vmatmul.msk.f32.gmra.mxu3 %vm132_vm5, %v343_v9  ;;  %vm630_vm5 = vcmask 15360  }
 0x430   :  { %v411_v11 = vpop.f32.mrf.mxu2 }
 0x431   :  { %v1153_v12 = vadd.f32 %v411_v11, %v381_v10 }
 0x433   :  { %417 = vadd.xlane.f32.xlu2 %v1153_v12  ;;  %v423_v19 = vmul.f32 %v1153_v12, %v1153_v12 }
 0x436   :  { %v480_v13 = vpop.f32.mrf.mxu3 }
 0x437   :  { %v1156_v14 = vadd.f32 %v480_v13, %v381_v10 }
 0x438   :  { %v414_v7 = vpop.f32.mrf.mxu2 }
 0x439   :  { %v1158_v16 = vadd.f32 %v414_v7, %v386_v15  ;;  %486 = vadd.xlane.f32.xlu0 %v1156_v14  ;;  %v492_v60 = vmul.f32 %v1156_v14, %v1156_v14 }
 0x43b   :  { %419 = vadd.xlane.f32.xlu1 %v1158_v16  ;;  %v424_v18 = vmul.f32 %v1158_v16, %v1158_v16 }
 0x43e   :  { %v483_v5 = vpop.f32.mrf.mxu3 }
 0x43f   :  { %v1162_v17 = vadd.f32 %v483_v5, %v386_v15 }
 0x441   :  { %488 = vadd.xlane.f32.xlu0 %v1162_v17  ;;  %v493_v62 = vmul.f32 %v1162_v17, %v1162_v17 }
 0x443   :  { %427 = vadd.xlane.f32.xlu1 %v424_v18  ;;  %496 = vadd.xlane.f32.xlu2 %v493_v62 }
 0x449   :  { %494 = vadd.xlane.f32.xlu0 %v492_v60 }
 0x44b   :  { %425 = vadd.xlane.f32.xlu1 %v423_v19 }
 0x4a6   :  { %v418_v21 = vpop.xlane.xlu2 %417 }
 0x4ac   :  { %v487_v20 = vpop.xlane.xlu0 %486 }
 0x4ad   :  { %v490_v29 = vadd.f32 %v487_v20, %v418_v21 }
 0x4ae   :  { %v420_v22 = vpop.xlane.xlu1 %419 }
 0x4af   :  { %v500_v33 = vmul.f32 0.00390625, %v490_v29 }
 0x4b1   :  { %v504_v38 = vmul.f32 %v500_v33, %v500_v33 }
 0x4b4   :  { %v489_v23 = vpop.xlane.xlu0 %488 }
 0x4b5   :  { %v491_v24 = vadd.f32 %v489_v23, %v420_v22  ;;  %v619_v23 = vld [vmem:[%s1256_s12 + $0x8] sm:$0xff] }
 0x4b6   :  { %v428_v25 = vpop.xlane.xlu1 %427  ;;  %v497_v26 = vpop.xlane.xlu2 %496 }
 0x4b7   :  { %v501_v27 = vmul.f32 0.00390625, %v491_v24  ;;  %v499_v28 = vadd.f32 %v497_v26, %v428_v25  ;;  %v618_v24 = vld [vmem:[%s1256_s12] sm:$0xff] }
 0x4b9   :  { %v505_v30 = vmul.f32 %v501_v27, %v501_v27  ;;  %v503_v31 = vmul.f32 0.00390625, %v499_v28 }
 0x4bb   :  { %v507_v32 = vsub.f32 %v503_v31, %v505_v30 }
 0x4bc   :  { %v495_v35 = vpop.xlane.xlu0 %494 }
 0x4bd   :  { %v511_v34 = vadd.f32 1e-05, %v507_v32 }
 0x4be   :  { %v426_v36 = vpop.xlane.xlu1 %425 }
 0x4bf   :  { %868 = vrsqrt.f32 %v511_v34  ;;  %v498_v37 = vadd.f32 %v495_v35, %v426_v36  ;;  %vm528_vm13 = vweird.f32 %v511_v34 }
 0x4c1   :  { %v502_v39 = vmul.f32 0.00390625, %v498_v37 }
 0x4c3   :  { %v506_v40 = vsub.f32 %v502_v39, %v504_v38  ;;  %v616_v38 = vld [vmem:[%s1255_s11] sm:$0xff]  ;;  %v617_v39 = vld [vmem:[%s1255_s11 + $0x8] sm:$0xff] }
 0x4c5   :  { %v869_v41 = vpop.eup %868  ;;  %v510_v42 = vadd.f32 1e-05, %v506_v40  ;;  %v911_v40 = vmov 1  }
 0x4c6   :  { %v523_v43 = vmul.f32 %v869_v41, %v511_v34  ;;  %vm529_vm12 = vweird.f32 %v869_v41 }
 0x4c7   :  { %870 = vrsqrt.f32 %v510_v42  ;;  %vm530_vm14 = vmor %vm528_vm13, %vm529_vm12  ;;  %vm518_vm1 = vweird.f32 %v510_v42 }
 0x4c8   :  { %v524_v44 = vmul.f32 %v869_v41, %v523_v43 }
 0x4ca   :  { %v525_v45 = vmul.f32 0.5, %v524_v44 }
 0x4cc   :  { %v526_v46 = vsub.f32 1.5, %v525_v45 }
 0x4cd   :  { %v871_v47 = vpop.eup %870 }
 0x4ce   :  { %v513_v48 = vmul.f32 %v871_v47, %v510_v42  ;;  %v527_v50 = vmul.f32 %v869_v41, %v526_v46  ;;  %vm519_vm15 = vweird.f32 %v871_v47 }
 0x4cf   :  { %vm520_vm2 = vmor %vm518_vm1, %vm519_vm15 }
 0x4d0   :  { %v514_v51 = vmul.f32 %v871_v47, %v513_v48  ;;  %v531_v52 = vsel %vm530_vm14, %v869_v41, %v527_v50 }
 0x4d1   :  { %v533_v53 = vmul.f32 %v531_v52, %v509_v49 }
 0x4d2   :  { %v515_v54 = vmul.f32 0.5, %v514_v51 }
 0x4d3   :  { %547 = vperm.xlu2 %820, %v533_v53   ;;  %v537_v56 = vmul.f32 %v533_v53, %v501_v27 }
 0x4d4   :  { %v516_v57 = vsub.f32 1.5, %v515_v54 }
 0x4d5   :  { %v539_v58 = vsub.f32 %v535_v55, %v537_v56 }
 0x4d6   :  { %v517_v61 = vmul.f32 %v871_v47, %v516_v57 }
 0x4d7   :  { %559 = vperm.xlu0 %818, %v539_v58  }
 0x4d8   :  { %v521_v63 = vsel %vm520_vm2, %v871_v47, %v517_v61 }
 0x4d9   :  { %v532_v4 = vmul.f32 %v521_v63, %v508_v59 }
 0x4db   :  { %542 = vperm.xlu1 %819, %v532_v4   ;;  %v536_v8 = vmul.f32 %v532_v4, %v500_v33  ;;  %v584_v33 = vld [vmem:[%s1253_s9] sm:$0x3]  ;;  %s912_s9 = smov [#allocation3]  }
 0x4dc   :  { %s740_s11 = sshll.u32 %s912_s9, 4  ;;  %s741_s11 = int_to_ptr.vmem [resolvable:$true] %s740_s11 }
 0x4dd   :  { %v538_v9 = vsub.f32 %v534_v6, %v536_v8 }
 0x4df   :  { %554 = vperm.xlu2 %820, %v538_v9  }
 0x52d   :  { %v548_v10 = vpop.permute.xlu2 %547 }
 0x52e   :  { %v551_v11 = vmul.f32 %v548_v10, %v1158_v16  ;;  %v567_v13 = vmul.f32 %v548_v10, %v1162_v17 }
 0x539   :  { %v555_v16 = vpop.permute.xlu2 %554 }
 0x549   :  { %v560_v15 = vpop.permute.xlu0 %559 }
 0x54a   :  { %v1187_v7 = vadd.f32 %v560_v15, %v551_v11  ;;  %v1189_v5 = vadd.f32 %v567_v13, %v560_v15 }
 0x54c   :  { %v565_v18 = vmax.f32 %v1187_v7, 0.0  ;;  %v571_v62 = vmax.f32 %v1189_v5, 0.0 }
 0x54d   :  { %v543_v60 = vpop.permute.xlu1 %542 }
 0x54e   :  { %v550_v19 = vmul.f32 %v543_v60, %v1153_v12  ;;  %v566_v20 = vmul.f32 %v543_v60, %v1156_v14  ;;  %574 = vadd.xlane.f32.xlu0 %v565_v18  ;;  %578 = vadd.xlane.f32.xlu1 %v571_v62  ;;  %v585_v14 = vld [vmem:[%s1254_s10] sm:$0x3] }
 0x550   :  { %v1199_v17 = vadd.f32 %v555_v16, %v550_v19  ;;  %v1201_v21 = vadd.f32 %v566_v20, %v555_v16 }
 0x552   :  { %v564_v22 = vmax.f32 %v1199_v17, 0.0  ;;  %v570_v12 = vmax.f32 %v1201_v21, 0.0  ;;  %v722_v17 = vadd.f32 %v571_v62, %v1002_v2 }
 0x554   :  { %572 = vadd.xlane.f32.xlu2 %v564_v22 }
 0x556   :  { %576 = vadd.xlane.f32.xlu0 %v570_v12 }
 0x567   :  { %588 = vperm.xlu1 %819, %v585_v14  }
 0x56a   :  { %627 = vperm.xlu0 %818, %v619_v23   ;;  %v721_v23 = vadd.f32 %v570_v12, %v1007_v3 }
 0x56c   :  { %622 = vperm.xlu2 %820, %v618_v24  }
 0x574   :  { %861 = vset.pattern.permute.xlu2 %v911_v40 }
 0x5c1   :  { %v575_v25 = vpop.xlane.xlu0 %574  ;;  %v579_v26 = vpop.xlane.xlu1 %578 }
 0x5c2   :  { %v581_v27 = vsel %vm45_vm0, %v575_v25, %v579_v26  ;;  %v702_v26 = vadd.f32 %v564_v22, %v993_v1 }
 0x5c3   :  { %v583_v28 = vmul.f32 0.0078125, %v581_v27 }
 0x5c5   :  { %609 = vmatpush.msrb.mxu0 %v583_v28 }
 0x5c7   :  { %v573_v29 = vpop.xlane.xlu2 %572 }
 0x5c9   :  { %v577_v30 = vpop.xlane.xlu0 %576 }
 0x5ca   :  { %v580_v31 = vsel %vm45_vm0, %v573_v29, %v577_v30  ;;  %v703_v29 = vadd.f32 %v565_v18, %v988_v0 }
 0x5cb   :  { %v582_v32 = vmul.f32 0.0078125, %v580_v31 }
 0x5cd   :  { %610 = vmatpush.msrb.mxu0 %v582_v32 }
 0x5ce   :  { %762 = vmatmul.msk.f32.vlgmr.msrb.gmra.mxu0 %vm591_vm3, %v584_v33 }
 0x5cf   :  { %v623_v41 = vpop.permute.xlu2 %622 }
 0x5d9   :  { %v589_v34 = vpop.permute.xlu1 %588 }
 0x5dc   :  { %v628_v46 = vpop.permute.xlu0 %627 }
 0x64b   :  { %v612_v35 = vpop.f32.mrf.mxu0 }
 0x64c   :  { %v613_v36 = vadd.f32 %v612_v35, %v589_v34 }
 0x64e   :  { %v615_v37 = vmax.f32 %v613_v36, 0.0 }
 0x650   :  { %763 = vmatpush.msk.msrb.mxu1 %vm637_vm4, %v615_v37  ;;  %768 = vmatpush.msk.msrb.mxu2 %vm637_vm4, %v615_v37 }
 0x651   :  { %764 = vmatmul.msk.f32.vlgmr.msrb.gmra.mxu1 %vm630_vm5, %v616_v38  ;;  %765 = vmatmul.msk.f32.vlgmr.msrb.gmra.mxu2 %vm630_vm5, %v617_v39 }
 0x6ce   :  { %v658_v42 = vpop.f32.mrf.mxu1 }
 0x6cf   :  { %v659_v43 = vadd.f32 %v658_v42, %v623_v41 }
 0x6d1   :  { %v664_v44 = vsub.f32 0.0, %v659_v43 }
 0x6d3   :  { %v666_v45 = vmul.f32 1.442695, %v664_v44 }
 0x6d4   :  { %v661_v47 = vpop.f32.mrf.mxu2 }
 0x6d5   :  { %872 = vpow2.f32 %v666_v45  ;;  %v662_v48 = vadd.f32 %v661_v47, %v628_v46 }
 0x6d7   :  { %v665_v49 = vsub.f32 0.0, %v662_v48 }
 0x6d9   :  { %v668_v50 = vmul.f32 1.442695, %v665_v49 }
 0x6db   :  { %v873_v51 = vpop.eup %872  ;;  %874 = vpow2.f32 %v668_v50 }
 0x6dc   :  { %v670_v52 = vadd.f32 1.0, %v873_v51 }
 0x6de   :  { %876 = vrcp.f32 %v670_v52  ;;  %v683_v58 = vand.u32 2147483648, %v670_v52  ;;  %v681_v61 = vand.u32 2147483647, %v670_v52  ;;  %vm677_vm6 = vweird.f32 %v670_v52 }
 0x6e0   :  { %v684_v8 = vor.u32 1.1754944e-38, %v683_v58  ;;  %vm682_vm8 = vcmp.eq.f32.partialorder %v681_v61, 8.507059e+37 }
 0x6e1   :  { %v875_v53 = vpop.eup %874 }
 0x6e2   :  { %v671_v54 = vadd.f32 1.0, %v875_v53 }
 0x6e4   :  { %v877_v55 = vpop.eup %876  ;;  %878 = vrcp.f32 %v671_v54  ;;  %v697_v13 = vand.u32 2147483648, %v671_v54  ;;  %v695_v60 = vand.u32 2147483647, %v671_v54  ;;  %vm691_vm10 = vweird.f32 %v671_v54 }
 0x6e5   :  { %v673_v56 = vmul.f32 %v877_v55, %v670_v52  ;;  %vm678_vm0 = vweird.f32 %v877_v55 }
 0x6e6   :  { %vm679_vm7 = vmor %vm677_vm6, %vm678_vm0  ;;  %v698_v20 = vor.u32 1.1754944e-38, %v697_v13  ;;  %vm696_vm12 = vcmp.eq.f32.partialorder %v695_v60, 8.507059e+37 }
 0x6e7   :  { %v674_v57 = vsub.f32 1.0, %v673_v56 }
 0x6e9   :  { %v675_v59 = vmul.f32 %v877_v55, %v674_v57 }
 0x6ea   :  { %v879_v63 = vpop.eup %878 }
 0x6eb   :  { %v676_v4 = vadd.f32 %v877_v55, %v675_v59  ;;  %v687_v6 = vmul.f32 %v879_v63, %v671_v54  ;;  %vm692_vm9 = vweird.f32 %v879_v63 }
 0x6ec   :  { %vm693_vm11 = vmor %vm691_vm10, %vm692_vm9 }
 0x6ed   :  { %v680_v9 = vsel %vm679_vm7, %v877_v55, %v676_v4  ;;  %v688_v10 = vsub.f32 1.0, %v687_v6 }
 0x6ee   :  { %v685_v11 = vsel %vm682_vm8, %v684_v8, %v680_v9 }
 0x6ef   :  { %724 = vperm.xlu2 %861, %v685_v11   ;;  %706 = vperm.xlu1 %819, %v685_v11   ;;  %v689_v15 = vmul.f32 %v879_v63, %v688_v10 }
 0x6f1   :  { %v690_v19 = vadd.f32 %v879_v63, %v689_v15 }
 0x6f3   :  { %v694_v16 = vsel %vm693_vm11, %v879_v63, %v690_v19 }
 0x6f4   :  { %v699_v14 = vsel %vm696_vm12, %v698_v20, %v694_v16 }
 0x6f5   :  { %711 = vperm.xlu0 %818, %v699_v14  }
 0x6f7   :  { %862 = vset.pattern.permute.xlu1 %v911_v40 }
 0x6f8   :  { %728 = vperm.xlu1 %862, %v699_v14  }
 0x6fd   :  { %863 = vset.pattern.permute.xlu0 %v911_v40 }
 0x749   :  { %v725_v24 = vpop.permute.xlu2 %724 }
 0x74a   :  { %v731_v25 = vadd.f32 %v725_v24, %v721_v23 }
 0x74c   :  { %734 = vst [vmem:[#allocation3 + $0x10] sm:$0xff] %v731_v25 }
 0x761   :  { %v707_v27 = vpop.permute.xlu1 %706 }
 0x762   :  { %v714_v28 = vadd.f32 %v707_v27, %v702_v26 }
 0x764   :  { %716 = vst [vmem:[#allocation3] sm:$0xff] %v714_v28 }
 0x767   :  { %v712_v30 = vpop.permute.xlu0 %711 }
 0x768   :  { %v715_v3 = vadd.f32 %v712_v30, %v703_v29 }
 0x76a   :  { %717 = vst [vmem:[#allocation3 + $0x8] sm:$0xff] %v715_v3  ;;  %v729_v1 = vpop.permute.xlu1 %728 }
 0x76b   :  { %v732_v21 = vadd.f32 %v729_v1, %v722_v17 }
 0x76d   :  { %735 = vst [vmem:[#allocation3 + $0x18] sm:$0xff] %v732_v21 }
 0x76e   :  { %748 = dma.vmem_to_hbm [thread:$0]  %s741_s11, 512, %s743_s29, [#allocation4], %s913_s16, %s913_s16, %s914_s6  }
 0x76f   :  { %904 = dma.done.wait [#allocation4], 512  }
 0x770   :  { %905 = vsyncadd [#allocation4], 4294966784 }
 0x771   :  { %753 = vsyncpa [#allocation4], 1 }

</bundles_post_ra>
